<compile_context>
chip_gen: v7x
topology: tpu7x:2x2x1
jax: 0.10.0
libtpu: 0.0.40
codegen_flags: <defaults>
</compile_context>

<pallas_src>
import functools
import math

import jax
import jax.numpy as jnp
from jax.experimental import pallas as pl
from jax.experimental.pallas import tpu as pltpu


# ----------------------------------------------------------------------------
# Pallas kernel: one affine map (bf16 weight, f32 accumulation, f32 bias/out)
# ----------------------------------------------------------------------------
def _affine_kernel(x_ref, w_ref, b_ref, o_ref):
    # x arrives fp32; cast to bf16 only at the MXU input (free under the DMA).
    x = x_ref[...].astype(jnp.bfloat16)
    acc = jnp.dot(x, w_ref[...], preferred_element_type=jnp.float32)
    o_ref[...] = (acc + b_ref[...]).astype(o_ref.dtype)


# ----------------------------------------------------------------------------
# Offline parameter collapse (fp32 composition, then bf16 weight for shipping)
# ----------------------------------------------------------------------------
def collapse_params(p):
    """Compose fc1..fc4 (all affine, no activations) into one weight + bias.

    Returns (W_total bf16 [in, out], b_total f32 [1, out]).
    """
    f32 = jnp.float32
    w1, b1 = p["w1"].astype(f32), p["b1"].astype(f32)
    w2a1, b2a1 = p["w2a1"].astype(f32), p["b2a1"].astype(f32)
    w2a2, b2a2 = p["w2a2"].astype(f32), p["b2a2"].astype(f32)
    w2b1, b2b1 = p["w2b1"].astype(f32), p["b2b1"].astype(f32)
    w2b2, b2b2 = p["w2b2"].astype(f32), p["b2b2"].astype(f32)
    w3, b3 = p["w3"].astype(f32), p["b3"].astype(f32)
    w4, b4 = p["w4"].astype(f32), p["b4"].astype(f32)

    n3 = w2a2.shape[0]
    w3a, w3b = w3[:n3], w3[n3:]

    # branch a: xa2 = h1 @ (w2a1 @ w2a2) + (b2a1 @ w2a2 + b2a2)
    aa = w2a1 @ w2a2
    ca = b2a1 @ w2a2 + b2a2
    # branch b
    ab = w2b1 @ w2b2
    cb = b2b1 @ w2b2 + b2b2
    # fc3 over the concat == split-K sum:  y_pre4 = h1 @ M + d
    m = aa @ w3a + ab @ w3b
    d = ca @ w3a + cb @ w3b + b3
    # fold fc1 in front and fc4 behind
    w_total = w1 @ m @ w4
    b_total = (b1 @ m + d) @ w4 + b4

    return w_total.astype(jnp.bfloat16), b_total.astype(jnp.float32)


# ----------------------------------------------------------------------------
# Hardware-derived VMEM budget (v5e/v6e: 128 MiB, v7x: 64 MiB per TensorCore)
# ----------------------------------------------------------------------------
@functools.lru_cache(maxsize=None)
def _vmem_budget_bytes():
    try:
        cap = int(pltpu.get_tpu_info().vmem_capacity_bytes)
    except Exception:
        cap = 64 << 20  # conservative fallback: smallest current per-core VMEM
    # leave headroom for compiler scratch / pipeline buffers
    return max(cap - (16 << 20), 16 << 20)


# ----------------------------------------------------------------------------
# Wrapper
# ----------------------------------------------------------------------------
@jax.jit
def parallel_model_split_forward(x_nchw, w_total, b_total):
    """x_nchw: [B, 512*factor, 1, 1] float32.  Returns [B, 512*factor] float32."""
    batch, channels = x_nchw.shape[0], x_nchw.shape[1]
    # explicit squeeze of the 1x1 spatial dims (safe for batch == 1 too)
    x = x_nchw.reshape(batch, channels)
    k, n = w_total.shape

    xb = batch * k * 4
    wb = int(w_total.size) * w_total.dtype.itemsize
    bb = n * 4
    ob = batch * n * 4
    footprint = xb + wb + bb + ob

    budget = _vmem_budget_bytes()
    cost = pl.CostEstimate(flops=2 * batch * k * n,
                           transcendentals=0,
                           bytes_accessed=footprint)
    vmem_spec = pl.BlockSpec(memory_space=pltpu.MemorySpace.VMEM)
    out_shape = jax.ShapeDtypeStruct((batch, n), jnp.float32)

    if footprint + (4 << 20) <= budget:
        # --- fully-resident, grid-less path (the normal case; factor small) ---
        vmem_limit = min(footprint + (8 << 20), budget)
        return pl.pallas_call(
            _affine_kernel,
            out_shape=out_shape,
            in_specs=[vmem_spec, vmem_spec, vmem_spec],
            out_specs=vmem_spec,
            compiler_params=pltpu.CompilerParams(vmem_limit_bytes=int(vmem_limit)),
            cost_estimate=cost,
        )(x, w_total, b_total)

    # --- streamed N-tiled path for very large `factor` (weight not resident) ---
    # TODO(synk): also tile K (with a pl.when-guarded accumulator) if a single
    # [K, 512] weight column block ever exceeds the VMEM budget.
    tn = 512
    assert n % tn == 0, (n, tn)
    per_step = 2 * (k * tn * w_total.dtype.itemsize + tn * 4 + batch * tn * 4)
    vmem_limit = min(xb + per_step + (8 << 20), budget)
    return pl.pallas_call(
        _affine_kernel,
        out_shape=out_shape,
        grid=(n // tn,),
        in_specs=[pl.BlockSpec((batch, k), lambda j: (0, 0)),
                  pl.BlockSpec((k, tn), lambda j: (0, j)),
                  pl.BlockSpec((1, tn), lambda j: (0, j))],
        out_specs=pl.BlockSpec((batch, tn), lambda j: (0, j)),
        compiler_params=pltpu.CompilerParams(
            dimension_semantics=("parallel",),
            vmem_limit_bytes=int(vmem_limit)),
        cost_estimate=cost,
    )(x, w_total, b_total)


# ----------------------------------------------------------------------------
# Deterministic parameter init (PyTorch nn.Linear default: U(-k, k), k=1/sqrt(fan_in))
# ----------------------------------------------------------------------------
def _init_linear(key, in_features, out_features):
    kw, kb = jax.random.split(key)
    bound = 1.0 / math.sqrt(in_features)
    # stored already transposed: [in, out]
    w = jax.random.uniform(kw, (in_features, out_features), jnp.float32, -bound, bound)
    b = jax.random.uniform(kb, (1, out_features), jnp.float32, -bound, bound)
    return w, b


def make_params(factor, key):
    n1 = 512 * factor        # linear1N
    n2 = 2048 * factor       # linear2N
    n3 = 512 * factor        # linear3N
    n4 = 2 * n3              # linear4N
    n5 = 512 * factor        # linear5N

    keys = jax.random.split(key, 7)
    p = {}
    p["w1"],   p["b1"]   = _init_linear(keys[0], n1, n2)   # fc1
    p["w2a1"], p["b2a1"] = _init_linear(keys[1], n2, n3)   # fc2a1
    p["w2a2"], p["b2a2"] = _init_linear(keys[2], n3, n3)   # fc2a2
    p["w2b1"], p["b2b1"] = _init_linear(keys[3], n2, n3)   # fc2b1
    p["w2b2"], p["b2b2"] = _init_linear(keys[4], n3, n3)   # fc2b2
    p["w3"],   p["b3"]   = _init_linear(keys[5], n4, n5)   # fc3
    p["w4"],   p["b4"]   = _init_linear(keys[6], n5, n5)   # fc4
    return p


# ----------------------------------------------------------------------------
# References
# ----------------------------------------------------------------------------
def reference_forward_f32(x_nchw, p):
    """Exact (fp32, per-layer) mirror of the PyTorch forward."""
    x = x_nchw.reshape(x_nchw.shape[0], x_nchw.shape[1])
    h1 = x @ p["w1"] + p["b1"]
    xa2 = (h1 @ p["w2a1"] + p["b2a1"]) @ p["w2a2"] + p["b2a2"]
    xb2 = (h1 @ p["w2b1"] + p["b2b1"]) @ p["w2b2"] + p["b2b2"]
    y = jnp.concatenate([xa2, xb2], axis=1)
    y = y @ p["w3"] + p["b3"]
    y = y @ p["w4"] + p["b4"]
    return y


def reference_forward_collapsed(x_nchw, w_total_bf16, b_total_f32):
    """Same precision policy as the kernel (bf16 x bf16 -> f32 acc, f32 bias)."""
    x = x_nchw.reshape(x_nchw.shape[0], x_nchw.shape[1]).astype(jnp.bfloat16)
    return (jnp.dot(x, w_total_bf16, preferred_element_type=jnp.float32)
            + b_total_f32)


if __name__ == "__main__":
    factor = 1            # linear1N=512, linear2N=2048, linear3N=512, linear4N=1024, linear5N=512
    batch = 8

    key = jax.random.PRNGKey(0)
    kx, kp = jax.random.split(key)

    # NCHW-style input with 1x1 spatial, as implied by the squeeze in forward()
    x = jax.random.normal(kx, (batch, 512 * factor, 1, 1), jnp.float32)
    params = make_params(factor, kp)

    # offline (once per model) fp32 composition of the activation-free network
    w_total, b_total = collapse_params(params)
    assert w_total.shape == (512 * factor, 512 * factor)

    out = parallel_model_split_forward(x, w_total, b_total)
    out = jax.block_until_ready(out)
    assert out.shape == (batch, 512 * factor), out.shape

    # tight check against the kernel's own precision policy ...
    ref_policy = reference_forward_collapsed(x, w_total, b_total)
    err_policy = float(jnp.max(jnp.abs(out - ref_policy)))
    assert jnp.allclose(out, ref_policy, rtol=1e-2, atol=1e-3), err_policy

    # ... and against the exact fp32 per-layer (PyTorch) semantics
    ref_f32 = reference_forward_f32(x, params)
    err_f32 = float(jnp.max(jnp.abs(out - ref_f32)))
    assert jnp.allclose(out, ref_f32, rtol=3e-2, atol=1e-2), err_f32

    print("KERNEL_OK")
</pallas_src>

<mosaic_0001>
module attributes {stable_mosaic.version = 11 : i64} {
  func.func @_affine_kernel(%arg0: memref<8x512xf32, #tpu.memory_space<vmem>>, %arg1: memref<512x512xbf16, #tpu.memory_space<vmem>>, %arg2: memref<1x512xf32, #tpu.memory_space<vmem>>, %arg3: memref<8x512xf32, #tpu.memory_space<vmem>>) attributes {dimension_semantics = [], scalar_prefetch = 0 : i64, scratch_operands = 0 : i64, tpu.core_type = #tpu.core_type<tc>} {
    %c0 = arith.constant 0 : index
    %c0_0 = arith.constant 0 : index
    %0 = vector.load %arg0[%c0, %c0_0] : memref<8x512xf32, #tpu.memory_space<vmem>>, vector<8x512xf32>
    %1 = arith.truncf %0 : vector<8x512xf32> to vector<8x512xbf16>
    %c0_1 = arith.constant 0 : index
    %c0_2 = arith.constant 0 : index
    %2 = vector.load %arg1[%c0_1, %c0_2] : memref<512x512xbf16, #tpu.memory_space<vmem>>, vector<512x512xbf16>
    %cst = arith.constant dense<0.000000e+00> : vector<8x512xf32>
    %3 = tpu.matmul %1, %2, %cst {dimension_numbers = #tpu.dot_dimension_numbers<[1], [0], [0], [1], [0, 0, 1, 1], [], []>} : vector<8x512xbf16>, vector<512x512xbf16>, vector<8x512xf32> -> vector<8x512xf32>
    %c0_3 = arith.constant 0 : index
    %c0_4 = arith.constant 0 : index
    %4 = vector.load %arg2[%c0_3, %c0_4] : memref<1x512xf32, #tpu.memory_space<vmem>>, vector<1x512xf32>
    %5 = vector.broadcast %4 : vector<1x512xf32> to vector<8x512xf32>
    %6 = arith.addf %3, %5 : vector<8x512xf32>
    %c0_5 = arith.constant 0 : index
    %c0_6 = arith.constant 0 : index
    %7 = vector.load %arg3[%c0_5, %c0_6] : memref<8x512xf32, #tpu.memory_space<vmem>>, vector<8x512xf32>
    tpu.vector_store %arg3[%c0_5, %c0_6], %6 {strides = array<i32>} : memref<8x512xf32, #tpu.memory_space<vmem>>, vector<8x512xf32>,
    return
  }
}

</mosaic_0001>

<bundles_post_ra>
// kernel: parallel_model_split_forward.1
= control target key start
LH: loop header
LB: loop body
LE: loop exit
PB: predicated region body
PF: predicated region fallthrough
CT: control target
= control target key end

     0   :  { %8 = vsyncpa [#allocation3], 0  ;;  %s1457_s0 = inlined_call_operand.vmem [shape: f32[8,512], index: 0, kind: input, shape index: {}]   ;;  %s1458_s1 = inlined_call_operand.hbm [shape: bf16[512,512], index: 1, kind: input, shape index: {}]   ;;  %s1459_s2 = inlined_call_operand.vmem [shape: f32[1,512], index: 2, kind: input, shape index: {}]   ;;  %s1460_s3 = inlined_call_operand.hbm [shape: f32[8,512], index: 3, kind: output, shape index: {}]  }
   0x1   :  { %9 = vsyncpa [#allocation4], 0  ;;  %s1394_s12 = smov [#allocation2]   ;;  %s1346_s16 = scalar_lea.hbm %s1458_s1, 16384 }
   0x2   :  { %s17_s13 = sshll.u32 %s1394_s12, 4  ;;  %p1347_p0 = scmp.ne.s32.totalorder %s1458_s1, %s1346_s16  ;;  %s18_s13 = int_to_ptr.vmem [resolvable:$true] %s17_s13 }
   0x3   :  { %p1350_p1 = scmp.lt.u32.totalorder %s1346_s16, %s1458_s1 }
   0x5   :  { %p1352_p2 = pnand %p1350_p1, %p1347_p0 }
   0x7   :  { %1355 = shalt.err (!%p1352_p2)
}
   0x8   :  { %s1356_s21 = scalar_lea.vmem %s18_s13, 16384  ;;  %p1361_p4 = scmp.lt.s32.totalorder %s18_s13, %s18_s13 }
   0x9   :  { %p1357_p3 = scmp.ne.s32.totalorder %s18_s13, %s1356_s21  ;;  %p1362_p5 = scmp.lt.s32.totalorder %s1356_s21, %s1356_s21 }
   0xb   :  { %p1363_p6 = por %p1362_p5, %p1361_p4 }
   0xd   :  { %p1364_p7 = pnand %p1363_p6, %p1357_p3 }
   0xf   :  { %1367 = shalt.err (!%p1364_p7)
}
  0x10   :  { %s1395_s22 = smov 256   ;;  %s1396_s23 = smov 16  }
  0x11   :  { %23 = dma.hbm_to_vmem [thread:$0]  %s1458_s1, 16384, %s18_s13, [#allocation3], %s1395_s22, %s1395_s22, %s1396_s23  }
  0x12   :  { %1390 = dma.done.wait [#allocation3], 16384  }
  0x13   :  { %1391 = vsyncadd [#allocation3], 4294950912  ;;  %v1154_v0 = vld [vmem:[#allocation2 + $0x4] ss:$16 sps:$4 sm:$0xff]   ;;  %v1156_v1 = vld [vmem:[#allocation2 + $0xc] ss:$16 sps:$4 sm:$0xff]  }
  0x14   :  { %827 = vmatprep.subr.bf16.mxu0 %v1154_v0  ;;  %v1158_v2 = vld [vmem:[#allocation2] ss:$16 sps:$4 sm:$0xff]   ;;  %v1159_v3 = vld [vmem:[#allocation2 + $0x8] ss:$16 sps:$4 sm:$0xff]   ;;  %909 = vmatprep.subr.bf16.mxu1 %v1156_v1  ;;  %v1160_v4 = vld [vmem:[#allocation2 + $0x24] ss:$16 sps:$4 sm:$0xff]  }
  0x15   :  { %828 = vmatpush1.bf16.msra.mxu0 %v1158_v2  ;;  %910 = vmatpush1.bf16.msra.mxu1 %v1159_v3  ;;  %v1162_v5 = vld [vmem:[#allocation2 + $0x2c] ss:$16 sps:$4 sm:$0xff]   ;;  %v1164_v6 = vld [vmem:[#allocation2 + $0x20] ss:$16 sps:$4 sm:$0xff]   ;;  %v1165_v7 = vld [vmem:[#allocation2 + $0x28] ss:$16 sps:$4 sm:$0xff]  }
  0x16   :  { %829 = vmatprep.subr.bf16.mxu0 %v1160_v4  ;;  %911 = vmatprep.subr.bf16.mxu1 %v1162_v5  ;;  %v1166_v8 = vld [vmem:[#allocation2 + $0x44] ss:$16 sps:$4 sm:$0xff]   ;;  %v1168_v9 = vld [vmem:[#allocation2 + $0x4c] ss:$16 sps:$4 sm:$0xff]   ;;  %v1170_v10 = vld [vmem:[#allocation2 + $0x40] ss:$16 sps:$4 sm:$0xff]  }
  0x17   :  { %v1171_v11 = vld [vmem:[#allocation2 + $0x48] ss:$16 sps:$4 sm:$0xff]   ;;  %v1172_v12 = vld [vmem:[#allocation2 + $0x64] ss:$16 sps:$4 sm:$0xff]   ;;  %v1174_v13 = vld [vmem:[#allocation2 + $0x6c] ss:$16 sps:$4 sm:$0xff]  }
  0x18   :  { %v1176_v14 = vld [vmem:[#allocation2 + $0x60] ss:$16 sps:$4 sm:$0xff]   ;;  %v1177_v15 = vld [vmem:[#allocation2 + $0x68] ss:$16 sps:$4 sm:$0xff]   ;;  %v1178_v16 = vld [vmem:[#allocation2 + $0x84] ss:$16 sps:$4 sm:$0xff]  }
  0x19   :  { %830 = vmatpush1.bf16.msra.mxu0 %v1164_v6  ;;  %912 = vmatpush1.bf16.msra.mxu1 %v1165_v7  ;;  %v1180_v17 = vld [vmem:[#allocation2 + $0x8c] ss:$16 sps:$4 sm:$0xff]   ;;  %v1182_v18 = vld [vmem:[#allocation2 + $0x80] ss:$16 sps:$4 sm:$0xff]   ;;  %v1183_v19 = vld [vmem:[#allocation2 + $0x88] ss:$16 sps:$4 sm:$0xff]  }
  0x1a   :  { %831 = vmatprep.subr.bf16.mxu0 %v1166_v8  ;;  %913 = vmatprep.subr.bf16.mxu1 %v1168_v9  ;;  %v1184_v20 = vld [vmem:[#allocation2 + $0xa4] ss:$16 sps:$4 sm:$0xff]   ;;  %v1186_v21 = vld [vmem:[#allocation2 + $0xac] ss:$16 sps:$4 sm:$0xff]   ;;  %v1188_v22 = vld [vmem:[#allocation2 + $0xa0] ss:$16 sps:$4 sm:$0xff]  }
  0x1b   :  { %v1189_v23 = vld [vmem:[#allocation2 + $0xa8] ss:$16 sps:$4 sm:$0xff]   ;;  %v1190_v24 = vld [vmem:[#allocation2 + $0xc4] ss:$16 sps:$4 sm:$0xff]   ;;  %v1192_v25 = vld [vmem:[#allocation2 + $0xcc] ss:$16 sps:$4 sm:$0xff]  }
  0x1c   :  { %v1194_v26 = vld [vmem:[#allocation2 + $0xc0] ss:$16 sps:$4 sm:$0xff]   ;;  %v1195_v27 = vld [vmem:[#allocation2 + $0xc8] ss:$16 sps:$4 sm:$0xff]   ;;  %v1196_v28 = vld [vmem:[#allocation2 + $0xe4] ss:$16 sps:$4 sm:$0xff]  }
  0x1d   :  { %832 = vmatpush1.bf16.msra.mxu0 %v1170_v10  ;;  %914 = vmatpush1.bf16.msra.mxu1 %v1171_v11  ;;  %v1198_v29 = vld [vmem:[#allocation2 + $0xec] ss:$16 sps:$4 sm:$0xff]   ;;  %v1200_v30 = vld [vmem:[#allocation2 + $0xe0] ss:$16 sps:$4 sm:$0xff]   ;;  %v1201_v31 = vld [vmem:[#allocation2 + $0xe8] ss:$16 sps:$4 sm:$0xff]  }
  0x1e   :  { %833 = vmatprep.subr.bf16.mxu0 %v1172_v12  ;;  %915 = vmatprep.subr.bf16.mxu1 %v1174_v13  ;;  %v1202_v32 = vld [vmem:[#allocation2 + $0x104] ss:$16 sps:$4 sm:$0xff]   ;;  %v1204_v33 = vld [vmem:[#allocation2 + $0x10c] ss:$16 sps:$4 sm:$0xff]   ;;  %v1206_v34 = vld [vmem:[#allocation2 + $0x100] ss:$16 sps:$4 sm:$0xff]  }
  0x1f   :  { %v1207_v35 = vld [vmem:[#allocation2 + $0x108] ss:$16 sps:$4 sm:$0xff]   ;;  %v1208_v36 = vld [vmem:[#allocation2 + $0x124] ss:$16 sps:$4 sm:$0xff]   ;;  %v1210_v37 = vld [vmem:[#allocation2 + $0x12c] ss:$16 sps:$4 sm:$0xff]  }
  0x20   :  { %v1212_v38 = vld [vmem:[#allocation2 + $0x120] ss:$16 sps:$4 sm:$0xff]   ;;  %v1213_v39 = vld [vmem:[#allocation2 + $0x128] ss:$16 sps:$4 sm:$0xff]   ;;  %v1214_v40 = vld [vmem:[#allocation2 + $0x144] ss:$16 sps:$4 sm:$0xff]  }
  0x21   :  { %834 = vmatpush1.bf16.msra.mxu0 %v1176_v14  ;;  %916 = vmatpush1.bf16.msra.mxu1 %v1177_v15  ;;  %v1216_v41 = vld [vmem:[#allocation2 + $0x14c] ss:$16 sps:$4 sm:$0xff]   ;;  %v1218_v42 = vld [vmem:[#allocation2 + $0x140] ss:$16 sps:$4 sm:$0xff]   ;;  %v1219_v43 = vld [vmem:[#allocation2 + $0x148] ss:$16 sps:$4 sm:$0xff]  }
  0x22   :  { %835 = vmatprep.subr.bf16.mxu0 %v1178_v16  ;;  %917 = vmatprep.subr.bf16.mxu1 %v1180_v17  ;;  %v1220_v44 = vld [vmem:[#allocation2 + $0x164] ss:$16 sps:$4 sm:$0xff]   ;;  %v1222_v45 = vld [vmem:[#allocation2 + $0x16c] ss:$16 sps:$4 sm:$0xff]   ;;  %v1224_v47 = vld [vmem:[#allocation2 + $0x160] ss:$16 sps:$4 sm:$0xff]  }
  0x23   :  { %v30_v46 = vld [vmem:[%s1457_s0 + $0x8] sm:$0xff]  ;;  %v1226_v50 = vld [vmem:[#allocation2 + $0x184] ss:$16 sps:$4 sm:$0xff]   ;;  %v1230_v52 = vld [vmem:[#allocation2 + $0x180] ss:$16 sps:$4 sm:$0xff]  }
  0x24   :  { %v34_v48 = vpack.c.bf16 %v30_v46, %v30_v46  ;;  %v1225_v49 = vld [vmem:[#allocation2 + $0x168] ss:$16 sps:$4 sm:$0xff]   ;;  %v1228_v51 = vld [vmem:[#allocation2 + $0x18c] ss:$16 sps:$4 sm:$0xff]   ;;  %v1232_v54 = vld [vmem:[#allocation2 + $0x1a4] ss:$16 sps:$4 sm:$0xff]  }
  0x25   :  { %836 = vmatpush1.bf16.msra.mxu0 %v1182_v18  ;;  %918 = vmatpush1.bf16.msra.mxu1 %v1183_v19  ;;  %v1231_v53 = vld [vmem:[#allocation2 + $0x188] ss:$16 sps:$4 sm:$0xff]   ;;  %v1234_v55 = vld [vmem:[#allocation2 + $0x1ac] ss:$16 sps:$4 sm:$0xff]   ;;  %v1236_v56 = vld [vmem:[#allocation2 + $0x1a0] ss:$16 sps:$4 sm:$0xff]  }
  0x26   :  { %837 = vmatprep.subr.bf16.mxu0 %v1184_v20  ;;  %919 = vmatprep.subr.bf16.mxu1 %v1186_v21  ;;  %v1237_v57 = vld [vmem:[#allocation2 + $0x1a8] ss:$16 sps:$4 sm:$0xff]   ;;  %v1238_v58 = vld [vmem:[#allocation2 + $0x1c4] ss:$16 sps:$4 sm:$0xff]   ;;  %v1240_v59 = vld [vmem:[#allocation2 + $0x1cc] ss:$16 sps:$4 sm:$0xff]  }
  0x27   :  { %859 = vmatprep.mubr.bf16.mxu0 %v34_v48  ;;  %941 = vmatprep.mubr.bf16.mxu1 %v34_v48  ;;  %v1242_v60 = vld [vmem:[#allocation2 + $0x1c0] ss:$16 sps:$4 sm:$0xff]   ;;  %v1243_v61 = vld [vmem:[#allocation2 + $0x1c8] ss:$16 sps:$4 sm:$0xff]   ;;  %v1244_v62 = vld [vmem:[#allocation2 + $0x1e4] ss:$16 sps:$4 sm:$0xff]  }
  0x28   :  { %v1246_v63 = vld [vmem:[#allocation2 + $0x1ec] ss:$16 sps:$4 sm:$0xff]   ;;  %v1248_v0 = vld [vmem:[#allocation2 + $0x1e0] ss:$16 sps:$4 sm:$0xff]   ;;  %v1249_v1 = vld [vmem:[#allocation2 + $0x1e8] ss:$16 sps:$4 sm:$0xff]  }
  0x29   :  { %838 = vmatpush1.bf16.msra.mxu0 %v1188_v22  ;;  %920 = vmatpush1.bf16.msra.mxu1 %v1189_v23  ;;  %v29_v2 = vld [vmem:[%s1457_s0] sm:$0xff]  ;;  %v1255_v4 = vld [vmem:[#allocation2 + $0x20c] ss:$16 sps:$4 sm:$0xff]   ;;  %v1253_v7 = vld [vmem:[#allocation2 + $0x208] ss:$16 sps:$4 sm:$0xff]  }
  0x2a   :  { %839 = vmatprep.subr.bf16.mxu0 %v1190_v24  ;;  %921 = vmatprep.subr.bf16.mxu1 %v1192_v25  ;;  %v1252_v3 = vld [vmem:[#allocation2 + $0x204] ss:$16 sps:$4 sm:$0xff]   ;;  %v33_v5 = vpack.c.bf16 %v29_v2, %v29_v2  ;;  %v1250_v6 = vld [vmem:[#allocation2 + $0x200] ss:$16 sps:$4 sm:$0xff]   ;;  %v1261_v9 = vld [vmem:[#allocation2 + $0x22c] ss:$16 sps:$4 sm:$0xff]  }
  0x2b   :  { %v1258_v8 = vld [vmem:[#allocation2 + $0x224] ss:$16 sps:$4 sm:$0xff]   ;;  %v1256_v10 = vld [vmem:[#allocation2 + $0x220] ss:$16 sps:$4 sm:$0xff]   ;;  %v1259_v11 = vld [vmem:[#allocation2 + $0x228] ss:$16 sps:$4 sm:$0xff]  }
  0x2c   :  { %v1264_v12 = vld [vmem:[#allocation2 + $0x244] ss:$16 sps:$4 sm:$0xff]   ;;  %v1267_v13 = vld [vmem:[#allocation2 + $0x24c] ss:$16 sps:$4 sm:$0xff]   ;;  %v1262_v14 = vld [vmem:[#allocation2 + $0x240] ss:$16 sps:$4 sm:$0xff]  }
  0x2d   :  { %840 = vmatpush1.bf16.msra.mxu0 %v1194_v26  ;;  %922 = vmatpush1.bf16.msra.mxu1 %v1195_v27  ;;  %v1265_v15 = vld [vmem:[#allocation2 + $0x248] ss:$16 sps:$4 sm:$0xff]   ;;  %v1270_v16 = vld [vmem:[#allocation2 + $0x264] ss:$16 sps:$4 sm:$0xff]   ;;  %v1273_v17 = vld [vmem:[#allocation2 + $0x26c] ss:$16 sps:$4 sm:$0xff]  }
  0x2e   :  { %841 = vmatprep.subr.bf16.mxu0 %v1196_v28  ;;  %923 = vmatprep.subr.bf16.mxu1 %v1198_v29  ;;  %v1268_v18 = vld [vmem:[#allocation2 + $0x260] ss:$16 sps:$4 sm:$0xff]   ;;  %v1271_v19 = vld [vmem:[#allocation2 + $0x268] ss:$16 sps:$4 sm:$0xff]   ;;  %v1276_v20 = vld [vmem:[#allocation2 + $0x284] ss:$16 sps:$4 sm:$0xff]  }
  0x2f   :  { %v1279_v21 = vld [vmem:[#allocation2 + $0x28c] ss:$16 sps:$4 sm:$0xff]   ;;  %v1274_v22 = vld [vmem:[#allocation2 + $0x280] ss:$16 sps:$4 sm:$0xff]   ;;  %v1277_v23 = vld [vmem:[#allocation2 + $0x288] ss:$16 sps:$4 sm:$0xff]  }
  0x30   :  { %v1282_v24 = vld [vmem:[#allocation2 + $0x2a4] ss:$16 sps:$4 sm:$0xff]   ;;  %v1285_v25 = vld [vmem:[#allocation2 + $0x2ac] ss:$16 sps:$4 sm:$0xff]   ;;  %v1280_v26 = vld [vmem:[#allocation2 + $0x2a0] ss:$16 sps:$4 sm:$0xff]  }
  0x31   :  { %842 = vmatpush1.bf16.msra.mxu0 %v1200_v30  ;;  %924 = vmatpush1.bf16.msra.mxu1 %v1201_v31  ;;  %v1283_v27 = vld [vmem:[#allocation2 + $0x2a8] ss:$16 sps:$4 sm:$0xff]   ;;  %v1288_v28 = vld [vmem:[#allocation2 + $0x2c4] ss:$16 sps:$4 sm:$0xff]   ;;  %v1291_v29 = vld [vmem:[#allocation2 + $0x2cc] ss:$16 sps:$4 sm:$0xff]  }
  0x32   :  { %843 = vmatprep.subr.bf16.mxu0 %v1202_v32  ;;  %925 = vmatprep.subr.bf16.mxu1 %v1204_v33  ;;  %v32_v30 = vld [vmem:[%s1457_s0 + $0x18] sm:$0xff]  ;;  %v1286_v32 = vld [vmem:[#allocation2 + $0x2c0] ss:$16 sps:$4 sm:$0xff]   ;;  %v1312_v46 = vld [vmem:[#allocation2 + $0x344] ss:$16 sps:$4 sm:$0xff]  }
  0x33   :  { %v36_v31 = vpack.c.bf16 %v32_v30, %v32_v30  ;;  %v1289_v33 = vld [vmem:[#allocation2 + $0x2c8] ss:$16 sps:$4 sm:$0xff]   ;;  %v1310_v48 = vld [vmem:[#allocation2 + $0x340] ss:$16 sps:$4 sm:$0xff]   ;;  %v1342_v2 = vld [vmem:[#allocation2 + $0x3e4] ss:$16 sps:$4 sm:$0xff]  }
  0x35   :  { %844 = vmatpush1.bf16.msra.mxu0 %v1206_v34  ;;  %926 = vmatpush1.bf16.msra.mxu1 %v1207_v35  ;;  %v1294_v34 = vld [vmem:[#allocation2 + $0x2e4] ss:$16 sps:$4 sm:$0xff]   ;;  %v1297_v35 = vld [vmem:[#allocation2 + $0x2ec] ss:$16 sps:$4 sm:$0xff]  }
  0x36   :  { %845 = vmatprep.subr.bf16.mxu0 %v1208_v36  ;;  %927 = vmatprep.subr.bf16.mxu1 %v1210_v37  ;;  %v1292_v36 = vld [vmem:[#allocation2 + $0x2e0] ss:$16 sps:$4 sm:$0xff]   ;;  %v1295_v37 = vld [vmem:[#allocation2 + $0x2e8] ss:$16 sps:$4 sm:$0xff]  }
  0x39   :  { %846 = vmatpush1.bf16.msra.mxu0 %v1212_v38  ;;  %928 = vmatpush1.bf16.msra.mxu1 %v1213_v39  ;;  %v1300_v38 = vld [vmem:[#allocation2 + $0x304] ss:$16 sps:$4 sm:$0xff]   ;;  %v1303_v39 = vld [vmem:[#allocation2 + $0x30c] ss:$16 sps:$4 sm:$0xff]  }
  0x3a   :  { %847 = vmatprep.subr.bf16.mxu0 %v1214_v40  ;;  %929 = vmatprep.subr.bf16.mxu1 %v1216_v41  ;;  %v1298_v40 = vld [vmem:[#allocation2 + $0x300] ss:$16 sps:$4 sm:$0xff]   ;;  %v1301_v41 = vld [vmem:[#allocation2 + $0x308] ss:$16 sps:$4 sm:$0xff]  }
  0x3d   :  { %848 = vmatpush1.bf16.msra.mxu0 %v1218_v42  ;;  %930 = vmatpush1.bf16.msra.mxu1 %v1219_v43  ;;  %v1306_v42 = vld [vmem:[#allocation2 + $0x324] ss:$16 sps:$4 sm:$0xff]   ;;  %v1309_v43 = vld [vmem:[#allocation2 + $0x32c] ss:$16 sps:$4 sm:$0xff]  }
  0x3e   :  { %849 = vmatprep.subr.bf16.mxu0 %v1220_v44  ;;  %931 = vmatprep.subr.bf16.mxu1 %v1222_v45  ;;  %v1304_v44 = vld [vmem:[#allocation2 + $0x320] ss:$16 sps:$4 sm:$0xff]   ;;  %v1307_v45 = vld [vmem:[#allocation2 + $0x328] ss:$16 sps:$4 sm:$0xff]  }
  0x41   :  { %850 = vmatpush1.bf16.msra.mxu0 %v1224_v47  ;;  %932 = vmatpush1.bf16.msra.mxu1 %v1225_v49  ;;  %v1315_v47 = vld [vmem:[#allocation2 + $0x34c] ss:$16 sps:$4 sm:$0xff]   ;;  %v1313_v49 = vld [vmem:[#allocation2 + $0x348] ss:$16 sps:$4 sm:$0xff]  }
  0x42   :  { %851 = vmatprep.subr.bf16.mxu0 %v1226_v50  ;;  %933 = vmatprep.subr.bf16.mxu1 %v1228_v51  ;;  %v1318_v50 = vld [vmem:[#allocation2 + $0x364] ss:$16 sps:$4 sm:$0xff]   ;;  %v1321_v51 = vld [vmem:[#allocation2 + $0x36c] ss:$16 sps:$4 sm:$0xff]  }
  0x45   :  { %852 = vmatpush1.bf16.msra.mxu0 %v1230_v52  ;;  %934 = vmatpush1.bf16.msra.mxu1 %v1231_v53  ;;  %v1316_v52 = vld [vmem:[#allocation2 + $0x360] ss:$16 sps:$4 sm:$0xff]   ;;  %v1319_v53 = vld [vmem:[#allocation2 + $0x368] ss:$16 sps:$4 sm:$0xff]  }
  0x46   :  { %853 = vmatprep.subr.bf16.mxu0 %v1232_v54  ;;  %935 = vmatprep.subr.bf16.mxu1 %v1234_v55  ;;  %v1324_v54 = vld [vmem:[#allocation2 + $0x384] ss:$16 sps:$4 sm:$0xff]   ;;  %v1327_v55 = vld [vmem:[#allocation2 + $0x38c] ss:$16 sps:$4 sm:$0xff]  }
  0x49   :  { %854 = vmatpush1.bf16.msra.mxu0 %v1236_v56  ;;  %936 = vmatpush1.bf16.msra.mxu1 %v1237_v57  ;;  %v1322_v56 = vld [vmem:[#allocation2 + $0x380] ss:$16 sps:$4 sm:$0xff]   ;;  %v1325_v57 = vld [vmem:[#allocation2 + $0x388] ss:$16 sps:$4 sm:$0xff]  }
  0x4a   :  { %855 = vmatprep.subr.bf16.mxu0 %v1238_v58  ;;  %937 = vmatprep.subr.bf16.mxu1 %v1240_v59  ;;  %v1330_v58 = vld [vmem:[#allocation2 + $0x3a4] ss:$16 sps:$4 sm:$0xff]   ;;  %v1333_v59 = vld [vmem:[#allocation2 + $0x3ac] ss:$16 sps:$4 sm:$0xff]  }
  0x4d   :  { %856 = vmatpush1.bf16.msra.mxu0 %v1242_v60  ;;  %938 = vmatpush1.bf16.msra.mxu1 %v1243_v61  ;;  %v1328_v60 = vld [vmem:[#allocation2 + $0x3a0] ss:$16 sps:$4 sm:$0xff]   ;;  %v1331_v61 = vld [vmem:[#allocation2 + $0x3a8] ss:$16 sps:$4 sm:$0xff]  }
  0x4e   :  { %857 = vmatprep.subr.bf16.mxu0 %v1244_v62  ;;  %939 = vmatprep.subr.bf16.mxu1 %v1246_v63  ;;  %v1336_v62 = vld [vmem:[#allocation2 + $0x3c4] ss:$16 sps:$4 sm:$0xff]   ;;  %v1339_v63 = vld [vmem:[#allocation2 + $0x3cc] ss:$16 sps:$4 sm:$0xff]  }
  0x51   :  { %858 = vmatpush1.bf16.msra.mxu0 %v1248_v0  ;;  %940 = vmatpush1.bf16.msra.mxu1 %v1249_v1  ;;  %v1334_v0 = vld [vmem:[#allocation2 + $0x3c0] ss:$16 sps:$4 sm:$0xff]   ;;  %v1337_v1 = vld [vmem:[#allocation2 + $0x3c8] ss:$16 sps:$4 sm:$0xff]  }
  0x52   :  { %868 = vmatprep.subr.bf16.mxu0 %v1252_v3  ;;  %950 = vmatprep.subr.bf16.mxu1 %v1255_v4  ;;  %v1345_v3 = vld [vmem:[#allocation2 + $0x3ec] ss:$16 sps:$4 sm:$0xff]   ;;  %v1340_v4 = vld [vmem:[#allocation2 + $0x3e0] ss:$16 sps:$4 sm:$0xff]  }
  0x54   :  { %860 = vmatmul.mubr.bf16.vlgmr.msra.gmra.mrb[0].mxu0 %v33_v5  ;;  %942 = vmatmul.mubr.bf16.vlgmr.msra.gmra.mrb[0].mxu1 %v33_v5  ;;  %v1343_v5 = vld [vmem:[#allocation2 + $0x3e8] ss:$16 sps:$4 sm:$0xff]  }
  0x55   :  { %869 = vmatpush1.bf16.msra.mxu0 %v1250_v6  ;;  %951 = vmatpush1.bf16.msra.mxu1 %v1253_v7  ;;  %v31_v6 = vld [vmem:[%s1457_s0 + $0x10] sm:$0xff]  ;;  %s1397_s0 = smov [#allocation5]  }
  0x56   :  { %870 = vmatprep.subr.bf16.mxu0 %v1258_v8  ;;  %952 = vmatprep.subr.bf16.mxu1 %v1261_v9  ;;  %v35_v7 = vpack.c.bf16 %v31_v6, %v31_v6  ;;  %v167_v8 = vlaneseq  ;;  %s1001_s8 = sshll.u32 %s1397_s0, 4  ;;  %s1002_s8 = int_to_ptr.vmem [resolvable:$true] %s1001_s8 }
  0x57   :  { %900 = vmatprep.mubr.bf16.mxu0 %v36_v31  ;;  %982 = vmatprep.mubr.bf16.mxu1 %v36_v31  ;;  %p1373_p9 = scmp.lt.s32.totalorder %s1002_s8, %s1002_s8 }
  0x58   :  { %v168_v9 = vshrl.u32 %v167_v8, 7 }
  0x59   :  { %871 = vmatpush1.bf16.msra.mxu0 %v1256_v10  ;;  %953 = vmatpush1.bf16.msra.mxu1 %v1259_v11 }
  0x5a   :  { %872 = vmatprep.subr.bf16.mxu0 %v1264_v12  ;;  %954 = vmatprep.subr.bf16.mxu1 %v1267_v13  ;;  %v169_v10 = vsub.s32 0, %v168_v9  ;;  %v177_v11 = vsub.s32 2, %v168_v9  ;;  %v165_v12 = vld [vmem:[%s1459_s2] sm:$0xf]  ;;  %v173_v13 = vsub.s32 1, %v168_v9  ;;  %s1368_s2 = scalar_lea.vmem %s1002_s8, 512 }
  0x5b   :  { %p1369_p8 = scmp.ne.s32.totalorder %s1002_s8, %s1368_s2  ;;  %p1374_p10 = scmp.lt.s32.totalorder %s1368_s2, %s1368_s2 }
  0x5d   :  { %873 = vmatpush1.bf16.msra.mxu0 %v1262_v14  ;;  %955 = vmatpush1.bf16.msra.mxu1 %v1265_v15  ;;  %v181_v14 = vsub.s32 3, %v168_v9  ;;  %v170_v15 = vrot.slane %v165_v12, %v169_v10  ;;  %p1375_p11 = por %p1374_p10, %p1373_p9 }
  0x5e   :  { %874 = vmatprep.subr.bf16.mxu0 %v1270_v16  ;;  %956 = vmatprep.subr.bf16.mxu1 %v1273_v17  ;;  %v178_v16 = vrot.slane %v165_v12, %v177_v11  ;;  %v174_v17 = vrot.slane %v165_v12, %v173_v13 }
  0x5f   :  { %p1376_p12 = pnand %p1375_p11, %p1369_p8 }
  0x61   :  { %875 = vmatpush1.bf16.msra.mxu0 %v1268_v18  ;;  %957 = vmatpush1.bf16.msra.mxu1 %v1271_v19  ;;  %v182_v18 = vrot.slane %v165_v12, %v181_v14 }
  0x62   :  { %876 = vmatprep.subr.bf16.mxu0 %v1276_v20  ;;  %958 = vmatprep.subr.bf16.mxu1 %v1279_v21 }
  0x65   :  { %877 = vmatpush1.bf16.msra.mxu0 %v1274_v22  ;;  %959 = vmatpush1.bf16.msra.mxu1 %v1277_v23 }
  0x66   :  { %878 = vmatprep.subr.bf16.mxu0 %v1282_v24  ;;  %960 = vmatprep.subr.bf16.mxu1 %v1285_v25 }
  0x69   :  { %879 = vmatpush1.bf16.msra.mxu0 %v1280_v26  ;;  %961 = vmatpush1.bf16.msra.mxu1 %v1283_v27 }
  0x6a   :  { %880 = vmatprep.subr.bf16.mxu0 %v1288_v28  ;;  %962 = vmatprep.subr.bf16.mxu1 %v1291_v29 }
  0x6d   :  { %881 = vmatpush1.bf16.msra.mxu0 %v1286_v32  ;;  %963 = vmatpush1.bf16.msra.mxu1 %v1289_v33 }
  0x6e   :  { %882 = vmatprep.subr.bf16.mxu0 %v1294_v34  ;;  %964 = vmatprep.subr.bf16.mxu1 %v1297_v35 }
  0x71   :  { %883 = vmatpush1.bf16.msra.mxu0 %v1292_v36  ;;  %965 = vmatpush1.bf16.msra.mxu1 %v1295_v37 }
  0x72   :  { %884 = vmatprep.subr.bf16.mxu0 %v1300_v38  ;;  %966 = vmatprep.subr.bf16.mxu1 %v1303_v39 }
  0x75   :  { %885 = vmatpush1.bf16.msra.mxu0 %v1298_v40  ;;  %967 = vmatpush1.bf16.msra.mxu1 %v1301_v41 }
  0x76   :  { %886 = vmatprep.subr.bf16.mxu0 %v1306_v42  ;;  %968 = vmatprep.subr.bf16.mxu1 %v1309_v43 }
  0x79   :  { %887 = vmatpush1.bf16.msra.mxu0 %v1304_v44  ;;  %969 = vmatpush1.bf16.msra.mxu1 %v1307_v45 }
  0x7a   :  { %888 = vmatprep.subr.bf16.mxu0 %v1312_v46  ;;  %970 = vmatprep.subr.bf16.mxu1 %v1315_v47 }
  0x7d   :  { %889 = vmatpush1.bf16.msra.mxu0 %v1310_v48  ;;  %971 = vmatpush1.bf16.msra.mxu1 %v1313_v49 }
  0x7e   :  { %890 = vmatprep.subr.bf16.mxu0 %v1318_v50  ;;  %972 = vmatprep.subr.bf16.mxu1 %v1321_v51 }
  0x81   :  { %891 = vmatpush1.bf16.msra.mxu0 %v1316_v52  ;;  %973 = vmatpush1.bf16.msra.mxu1 %v1319_v53 }
  0x82   :  { %892 = vmatprep.subr.bf16.mxu0 %v1324_v54  ;;  %974 = vmatprep.subr.bf16.mxu1 %v1327_v55 }
  0x85   :  { %893 = vmatpush1.bf16.msra.mxu0 %v1322_v56  ;;  %975 = vmatpush1.bf16.msra.mxu1 %v1325_v57 }
  0x86   :  { %894 = vmatprep.subr.bf16.mxu0 %v1330_v58  ;;  %976 = vmatprep.subr.bf16.mxu1 %v1333_v59 }
  0x89   :  { %895 = vmatpush1.bf16.msra.mxu0 %v1328_v60  ;;  %977 = vmatpush1.bf16.msra.mxu1 %v1331_v61 }
  0x8a   :  { %896 = vmatprep.subr.bf16.mxu0 %v1336_v62  ;;  %978 = vmatprep.subr.bf16.mxu1 %v1339_v63 }
  0x8d   :  { %897 = vmatpush1.bf16.msra.mxu0 %v1334_v0  ;;  %979 = vmatpush1.bf16.msra.mxu1 %v1337_v1 }
  0x8e   :  { %898 = vmatprep.subr.bf16.mxu0 %v1342_v2  ;;  %980 = vmatprep.subr.bf16.mxu1 %v1345_v3 }
  0x91   :  { %899 = vmatpush1.bf16.msra.mxu0 %v1340_v4  ;;  %981 = vmatpush1.bf16.msra.mxu1 %v1343_v5 }
  0x94   :  { %901 = vmatmul.mubr.bf16.vlgmr.msra.gmra.mrb[0].mxu0 %v35_v7  ;;  %983 = vmatmul.mubr.bf16.vlgmr.msra.gmra.mrb[0].mxu1 %v35_v7 }
 0x167   :  { %v902_v19 = vpop.f32.mrb[0].mxu0  ;;  %v984_v20 = vpop.f32.mrb[0].mxu1 }
 0x168   :  { %v1138_v21 = vadd.f32 %v902_v19, %v170_v15  ;;  %v1140_v22 = vadd.f32 %v984_v20, %v178_v16  ;;  %v904_v23 = vpop.f32.mrb[1].mxu0  ;;  %v986_v24 = vpop.f32.mrb[1].mxu1 }
 0x169   :  { %v1139_v25 = vadd.f32 %v904_v23, %v174_v17  ;;  %v1141_v26 = vadd.f32 %v986_v24, %v182_v18  ;;  %v906_v27 = vpop.f32.mrb[2].mxu0  ;;  %v988_v28 = vpop.f32.mrb[2].mxu1 }
 0x16a   :  { %991 = vst [vmem:[#allocation5] sm:$0xff] %v1138_v21  ;;  %993 = vst [vmem:[#allocation5 + $0x10] sm:$0xff] %v1140_v22  ;;  %v907_v29 = vpop.f32.mrb[3].mxu0  ;;  %v989_v30 = vpop.f32.mrb[3].mxu1 }
 0x16b   :  { %992 = vst [vmem:[#allocation5 + $0x8] sm:$0xff] %v1139_v25  ;;  %994 = vst [vmem:[#allocation5 + $0x18] sm:$0xff] %v1141_v26 }
 0x16c   :  { %1379 = shalt.err (!%p1376_p12)
}
 0x16d   :  { %s1380_s11 = scalar_lea.hbm %s1460_s3, 512 }
 0x16e   :  { %p1381_p13 = scmp.ne.s32.totalorder %s1460_s3, %s1380_s11  ;;  %p1384_p0 = scmp.lt.u32.totalorder %s1380_s11, %s1460_s3 }
 0x170   :  { %p1386_p1 = pnand %p1384_p0, %p1381_p13 }
 0x172   :  { %1389 = shalt.err (!%p1386_p1)
}
 0x173   :  { %1004 = dma.vmem_to_hbm [thread:$0]  %s1002_s8, 512, %s1460_s3, [#allocation4]  }
 0x174   :  { %1392 = dma.done.wait [#allocation4], 512  }
 0x175   :  { %1393 = vsyncadd [#allocation4], 4294966784 }
 0x176   :  { %1008 = vsyncpa [#allocation3], 1 }
 0x177   :  { %1009 = vsyncpa [#allocation4], 1 }

</bundles_post_ra>
